<compile_context>
chip_gen: v6e
topology: v6e:2x2x1
jax: 0.10.0
libtpu: 0.0.40
codegen_flags: <defaults>
</compile_context>

<pallas_src>
import math
import numpy as np
import jax
import jax.numpy as jnp
from jax.experimental import pallas as pl
from jax.experimental.pallas import tpu as pltpu


# ---------------------------------------------------------------------------
# Parameter construction (deterministic, in-script)
# ---------------------------------------------------------------------------

def fixed_embedding_table(c_in: int, d_model: int) -> np.ndarray:
    """FixedEmbedding weight: sinusoidal table of shape (c_in, d_model)."""
    w = np.zeros((c_in, d_model), dtype=np.float32)
    position = np.arange(c_in, dtype=np.float32)[:, None]
    div_term = np.exp(
        np.arange(0, d_model, 2, dtype=np.float32) * -(math.log(10000.0) / d_model)
    )
    w[:, 0::2] = np.sin(position * div_term)
    w[:, 1::2] = np.cos(position * div_term)
    return w


def make_temporal_tables(model_dim: int):
    """Build the two 128-row product tables used by the kernel plus the five
    individual tables (for the pure-JAX reference).

    tab1 rows [0,96)   : minute_emb[m] + hour_emb[h] at row m*24+h
    tab1 rows [96,128) : day_emb[d]              at row 96+d
    tab2 rows [0,91)   : weekday_emb[w] + month_emb[mo] at row w*13+mo
    tab2 rows [91,128) : zero padding
    """
    minute = fixed_embedding_table(4, model_dim)
    hour = fixed_embedding_table(24, model_dim)
    weekday = fixed_embedding_table(7, model_dim)
    day = fixed_embedding_table(32, model_dim)
    month = fixed_embedding_table(13, model_dim)

    mh = (minute[:, None, :] + hour[None, :, :]).reshape(4 * 24, model_dim)    # 96
    wm = (weekday[:, None, :] + month[None, :, :]).reshape(7 * 13, model_dim)  # 91

    tab1 = np.concatenate([mh, day], axis=0)                # exactly 128 rows
    tab2 = np.zeros((128, model_dim), dtype=np.float32)
    tab2[:wm.shape[0]] = wm

    singles = dict(minute=minute, hour=hour, weekday=weekday, day=day, month=month)
    return (jnp.asarray(tab1), jnp.asarray(tab2),
            {k: jnp.asarray(v) for k, v in singles.items()})


def make_conv_weight(key, input_dim: int, model_dim: int) -> jnp.ndarray:
    """Conv1d weight (model_dim, input_dim, 3), kaiming_normal_ fan_in / leaky_relu."""
    fan_in = input_dim * 3
    gain = math.sqrt(2.0)  # leaky_relu a=0 (PyTorch default for kaiming_normal_)
    std = gain / math.sqrt(fan_in)
    return std * jax.random.normal(key, (model_dim, input_dim, 3), dtype=jnp.float32)


# ---------------------------------------------------------------------------
# Pallas kernel
# ---------------------------------------------------------------------------

def embed_kernel(x_ref, idx_ref, w_ref, tab1_ref, tab2_ref, o_ref):
    # Token embedding: fused circular conv1d(k=3) == single (T,3C)@(3C,D) MXU matmul.
    acc = jnp.dot(x_ref[...], w_ref[...], preferred_element_type=jnp.float32)

    # Temporal embedding: 3 one-hot compares against the 128-row product tables,
    # accumulated directly in float32 (multi-hot @ table on the MXU).
    idx = idx_ref[...]                                          # (T, 3) int32
    t = idx.shape[0]
    iota = jax.lax.broadcasted_iota(jnp.int32, (t, 128), 1)     # built once per step
    a = idx[:, 0:1]        # minute*24 + hour     -> tab1 rows [0,96)
    b = idx[:, 1:2]        # 96 + day             -> tab1 rows [96,128)
    c = idx[:, 2:3]        # weekday*13 + month   -> tab2 rows [0,91)

    hits1 = ((iota == a) | (iota == b)).astype(jnp.float32)     # two hits in tab1
    hits2 = (iota == c).astype(jnp.float32)                     # one hit in tab2
    acc = acc + jnp.dot(hits1, tab1_ref[...], preferred_element_type=jnp.float32)
    acc = acc + jnp.dot(hits2, tab2_ref[...], preferred_element_type=jnp.float32)

    o_ref[...] = acc.astype(o_ref.dtype)


# ---------------------------------------------------------------------------
# Wrapper
# ---------------------------------------------------------------------------

def _round_up(a: int, b: int) -> int:
    return ((a + b - 1) // b) * b


def _vmem_estimate_bytes(T: int, C: int, D: int) -> int:
    """Rough per-step VMEM accounting (lane-padded tiles + temporaries)."""
    def tile_bytes(rows, cols, itemsize=4):
        return _round_up(max(rows, 1), 8) * _round_up(max(cols, 1), 128) * itemsize
    per_buf = tile_bytes(T, 3 * C) + tile_bytes(T, 3) + tile_bytes(T, D)
    resident = tile_bytes(3 * C, D) + 2 * tile_bytes(128, D)
    temps = 3 * tile_bytes(T, 128)          # iota, hits, mask headroom
    return 2 * per_buf + 2 * resident + temps


def perform_embedding(x, mark, conv_weight, tab1, tab2, tile_rows: int = 2048):
    """
    x:    (B, L, C) float32   -- input sequence
    mark: (B, L, >=6) int     -- time marks; cols 1..5 = month, day, weekday, hour, minute
    returns (B, L, D) float32
    """
    B, L, C = x.shape
    D = conv_weight.shape[0]
    BL = B * L

    # Circular shifts along the sequence axis fused into one (BL, 3C) slab.
    # TODO(synk): build this slab in-kernel from a haloed tile to drop this HBM pass.
    x_cat = jnp.concatenate(
        [jnp.roll(x, 1, axis=1), x, jnp.roll(x, -1, axis=1)], axis=-1
    ).reshape(BL, 3 * C)

    # Combined temporal indices into the two product tables (3 columns, int32).
    mark = mark.astype(jnp.int32)
    minute = mark[:, :, 5] // 15
    hour = mark[:, :, 4]
    weekday = mark[:, :, 3]
    day = mark[:, :, 2]
    month = mark[:, :, 1]
    idx_a = minute * 24 + hour          # tab1 rows [0, 96)
    idx_b = 96 + day                    # tab1 rows [96, 128)
    idx_c = weekday * 13 + month        # tab2 rows [0, 91)
    idx = jnp.stack([idx_a, idx_b, idx_c], axis=-1).reshape(BL, 3).astype(jnp.int32)

    # Conv weight (D, C, 3) -> single (3C, D) matmul weight; [w0; w1; w2] matches
    # the [prev | curr | next] concat order of x_cat.
    w_cat = jnp.concatenate(
        [conv_weight[:, :, 0].T, conv_weight[:, :, 1].T, conv_weight[:, :, 2].T],
        axis=0)

    # Row tiling: large tiles to amortize per-step overhead; prefer a tile that
    # divides BL (skips the tail pad and the output tail slice).
    T = min(_round_up(max(tile_rows, 8), 8), _round_up(BL, 8))
    if BL % T:
        for cand in range(T, max(T // 2, 8) - 1, -8):
            if BL % cand == 0:
                T = cand
                break
    BL_pad = _round_up(BL, T)
    if BL_pad != BL:
        x_cat = jnp.pad(x_cat, ((0, BL_pad - BL), (0, 0)))
        idx = jnp.pad(idx, ((0, BL_pad - BL), (0, 0)))   # pad rows hit valid table rows

    grid = (BL_pad // T,)

    # VMEM budget: double-buffered x/idx/out tiles + resident weights/tables +
    # the (T,128) one-hot temporaries.  Only raise the scoped limit if the
    # estimate gets close to the default (matters if tiles are scaled up on v7x).
    vmem_bytes = _vmem_estimate_bytes(T, C, D)
    cp_kwargs = dict(dimension_semantics=("parallel",))   # no carried accumulator
    if vmem_bytes > 24 * 1024 * 1024:
        cp_kwargs["vmem_limit_bytes"] = int(min(2 * vmem_bytes, 100 * 1024 * 1024))

    out = pl.pallas_call(
        embed_kernel,
        out_shape=jax.ShapeDtypeStruct((BL_pad, D), jnp.float32),
        grid=grid,
        in_specs=[
            pl.BlockSpec((T, 3 * C), lambda i: (i, 0)),      # [prev|curr|next] rows
            pl.BlockSpec((T, 3), lambda i: (i, 0)),          # temporal indices
            pl.BlockSpec((3 * C, D), lambda i: (0, 0)),      # fused conv weight (resident)
            pl.BlockSpec((128, D), lambda i: (0, 0)),        # product table 1 (resident)
            pl.BlockSpec((128, D), lambda i: (0, 0)),        # product table 2 (resident)
        ],
        out_specs=pl.BlockSpec((T, D), lambda i: (i, 0)),    # exact-size output, no pad
        compiler_params=pltpu.CompilerParams(**cp_kwargs),
    )(x_cat, idx, w_cat, tab1, tab2)

    if BL_pad != BL:
        out = out[:BL]
    return out.reshape(B, L, D)


# ---------------------------------------------------------------------------
# Pure-JAX reference (faithful 5-table sum, for correctness check)
# ---------------------------------------------------------------------------

def reference(x, mark, conv_weight, tables):
    w0 = conv_weight[:, :, 0].T
    w1 = conv_weight[:, :, 1].T
    w2 = conv_weight[:, :, 2].T
    token = (jnp.roll(x, 1, axis=1) @ w0) + (x @ w1) + (jnp.roll(x, -1, axis=1) @ w2)
    mark = mark.astype(jnp.int32)
    temporal = (tables["minute"][mark[:, :, 5] // 15]
                + tables["hour"][mark[:, :, 4]]
                + tables["weekday"][mark[:, :, 3]]
                + tables["day"][mark[:, :, 2]]
                + tables["month"][mark[:, :, 1]])
    return token + temporal


# ---------------------------------------------------------------------------
# Main
# ---------------------------------------------------------------------------

def _make_inputs(key, B, L, C):
    kx, k1, k2, k3, k4, k5 = jax.random.split(key, 6)
    x = jax.random.normal(kx, (B, L, C), dtype=jnp.float32)
    month = jax.random.randint(k1, (B, L), 0, 13)
    day = jax.random.randint(k2, (B, L), 0, 32)
    weekday = jax.random.randint(k3, (B, L), 0, 7)
    hour = jax.random.randint(k4, (B, L), 0, 24)
    minute = jax.random.randint(k5, (B, L), 0, 60)
    mark = jnp.stack(
        [jnp.zeros((B, L), jnp.int32), month, day, weekday, hour, minute], axis=-1
    ).astype(jnp.int32)
    return x, mark


if __name__ == "__main__":
    C = 4                # input_dim
    D = 32               # model_dim (even, as required by sinusoidal tables)

    key = jax.random.PRNGKey(0)
    kw, kin1, kin2 = jax.random.split(key, 3)

    conv_weight = make_conv_weight(kw, C, D)                    # (D, C, 3)
    tab1, tab2, single_tables = make_temporal_tables(D)

    # Small shape consistent with the module (batch=2, seq=8, input_dim=4, model_dim=32).
    x, mark = _make_inputs(kin1, 2, 8, C)
    out = perform_embedding(x, mark, conv_weight, tab1, tab2)
    out = jax.block_until_ready(out)
    ref = reference(x, mark, conv_weight, single_tables)
    np.testing.assert_allclose(np.asarray(out), np.asarray(ref), rtol=1e-5, atol=1e-5)
    assert out.shape == (2, 8, D)

    # Second check: multi-step grid with a ragged tail (BL=300, tile_rows=128).
    x2, mark2 = _make_inputs(kin2, 3, 100, C)
    out2 = perform_embedding(x2, mark2, conv_weight, tab1, tab2, tile_rows=128)
    out2 = jax.block_until_ready(out2)
    ref2 = reference(x2, mark2, conv_weight, single_tables)
    np.testing.assert_allclose(np.asarray(out2), np.asarray(ref2), rtol=1e-5, atol=1e-5)
    assert out2.shape == (3, 100, D)

    print("KERNEL_OK")
</pallas_src>

<mosaic_0001>
module attributes {stable_mosaic.version = 11 : i64} {
  func.func @embed_kernel(%arg0: i32, %arg1: memref<16x12xf32, #tpu.memory_space<vmem>>, %arg2: memref<16x3xi32, #tpu.memory_space<vmem>>, %arg3: memref<12x32xf32, #tpu.memory_space<vmem>>, %arg4: memref<128x32xf32, #tpu.memory_space<vmem>>, %arg5: memref<128x32xf32, #tpu.memory_space<vmem>>, %arg6: memref<16x32xf32, #tpu.memory_space<vmem>>) attributes {dimension_semantics = [#tpu.dimension_semantics<parallel>], iteration_bounds = array<i64: 1>, scalar_prefetch = 0 : i64, scratch_operands = 0 : i64, tpu.core_type = #tpu.core_type<tc>, window_params = [{transform_indices = @transform_0, window_bounds = array<i64: 16, 12>}, {transform_indices = @transform_1, window_bounds = array<i64: 16, 3>}, {pipeline_mode = #tpu.pipeline_mode<synchronous>, transform_indices = @transform_2, window_bounds = array<i64: 12, 32>}, {pipeline_mode = #tpu.pipeline_mode<synchronous>, transform_indices = @transform_3, window_bounds = array<i64: 128, 32>}, {pipeline_mode = #tpu.pipeline_mode<synchronous>, transform_indices = @transform_4, window_bounds = array<i64: 128, 32>}, {transform_indices = @transform_5, window_bounds = array<i64: 16, 32>}]} {
    %c0 = arith.constant 0 : index
    %c0_0 = arith.constant 0 : index
    %0 = vector.load %arg1[%c0, %c0_0] : memref<16x12xf32, #tpu.memory_space<vmem>>, vector<16x12xf32>
    %c0_1 = arith.constant 0 : index
    %c0_2 = arith.constant 0 : index
    %1 = vector.load %arg3[%c0_1, %c0_2] : memref<12x32xf32, #tpu.memory_space<vmem>>, vector<12x32xf32>
    %cst = arith.constant dense<0.000000e+00> : vector<16x32xf32>
    %2 = tpu.matmul %0, %1, %cst {dimension_numbers = #tpu.dot_dimension_numbers<[1], [0], [0], [1], [0, 0, 1, 1], [], []>} : vector<16x12xf32>, vector<12x32xf32>, vector<16x32xf32> -> vector<16x32xf32>
    %c0_3 = arith.constant 0 : index
    %c0_4 = arith.constant 0 : index
    %3 = vector.load %arg2[%c0_3, %c0_4] : memref<16x3xi32, #tpu.memory_space<vmem>>, vector<16x3xi32>
    %4 = tpu.iota {dimensions = array<i32: 1>} : vector<16x128xi32>
    %5 = vector.extract_strided_slice %3 {offsets = [0, 0], sizes = [16, 1], strides = [1, 1]} : vector<16x3xi32> to vector<16x1xi32>
    %6 = vector.extract_strided_slice %3 {offsets = [0, 1], sizes = [16, 1], strides = [1, 1]} : vector<16x3xi32> to vector<16x1xi32>
    %7 = vector.extract_strided_slice %3 {offsets = [0, 2], sizes = [16, 1], strides = [1, 1]} : vector<16x3xi32> to vector<16x1xi32>
    %8 = vector.broadcast %5 : vector<16x1xi32> to vector<16x128xi32>
    %9 = arith.cmpi eq, %4, %8 : vector<16x128xi32>
    %10 = vector.broadcast %6 : vector<16x1xi32> to vector<16x128xi32>
    %11 = arith.cmpi eq, %4, %10 : vector<16x128xi32>
    %12 = arith.ori %9, %11 : vector<16x128xi1>
    %13 = arith.extui %12 : vector<16x128xi1> to vector<16x128xi32>
    %14 = arith.sitofp %13 : vector<16x128xi32> to vector<16x128xf32>
    %15 = vector.broadcast %7 : vector<16x1xi32> to vector<16x128xi32>
    %16 = arith.cmpi eq, %4, %15 : vector<16x128xi32>
    %17 = arith.extui %16 : vector<16x128xi1> to vector<16x128xi32>
    %18 = arith.sitofp %17 : vector<16x128xi32> to vector<16x128xf32>
    %c0_5 = arith.constant 0 : index
    %c0_6 = arith.constant 0 : index
    %19 = vector.load %arg4[%c0_5, %c0_6] : memref<128x32xf32, #tpu.memory_space<vmem>>, vector<128x32xf32>
    %cst_7 = arith.constant dense<0.000000e+00> : vector<16x32xf32>
    %20 = tpu.matmul %14, %19, %cst_7 {dimension_numbers = #tpu.dot_dimension_numbers<[1], [0], [0], [1], [0, 0, 1, 1], [], []>} : vector<16x128xf32>, vector<128x32xf32>, vector<16x32xf32> -> vector<16x32xf32>
    %21 = arith.addf %2, %20 : vector<16x32xf32>
    %c0_8 = arith.constant 0 : index
    %c0_9 = arith.constant 0 : index
    %22 = vector.load %arg5[%c0_8, %c0_9] : memref<128x32xf32, #tpu.memory_space<vmem>>, vector<128x32xf32>
    %cst_10 = arith.constant dense<0.000000e+00> : vector<16x32xf32>
    %23 = tpu.matmul %18, %22, %cst_10 {dimension_numbers = #tpu.dot_dimension_numbers<[1], [0], [0], [1], [0, 0, 1, 1], [], []>} : vector<16x128xf32>, vector<128x32xf32>, vector<16x32xf32> -> vector<16x32xf32>
    %24 = arith.addf %21, %23 : vector<16x32xf32>
    %c0_11 = arith.constant 0 : index
    %c0_12 = arith.constant 0 : index
    %25 = vector.load %arg6[%c0_11, %c0_12] : memref<16x32xf32, #tpu.memory_space<vmem>>, vector<16x32xf32>
    tpu.vector_store %arg6[%c0_11, %c0_12], %24 {strides = array<i32>} : memref<16x32xf32, #tpu.memory_space<vmem>>, vector<16x32xf32>,
    return
  }
  func.func @transform_0(%arg0: i32) -> (i32, i32) {
    %c0_i32 = arith.constant 0 : i32
    %c0_i32_0 = arith.constant 0 : i32
    return %arg0, %c0_i32 : i32, i32
  }
  func.func @transform_1(%arg0: i32) -> (i32, i32) {
    %c0_i32 = arith.constant 0 : i32
    %c0_i32_0 = arith.constant 0 : i32
    return %arg0, %c0_i32 : i32, i32
  }
  func.func @transform_2(%arg0: i32) -> (i32, i32) {
    %c0_i32 = arith.constant 0 : i32
    %c0_i32_0 = arith.constant 0 : i32
    %c0_i32_1 = arith.constant 0 : i32
    return %c0_i32, %c0_i32_0 : i32, i32
  }
  func.func @transform_3(%arg0: i32) -> (i32, i32) {
    %c0_i32 = arith.constant 0 : i32
    %c0_i32_0 = arith.constant 0 : i32
    %c0_i32_1 = arith.constant 0 : i32
    return %c0_i32, %c0_i32_0 : i32, i32
  }
  func.func @transform_4(%arg0: i32) -> (i32, i32) {
    %c0_i32 = arith.constant 0 : i32
    %c0_i32_0 = arith.constant 0 : i32
    %c0_i32_1 = arith.constant 0 : i32
    return %c0_i32, %c0_i32_0 : i32, i32
  }
  func.func @transform_5(%arg0: i32) -> (i32, i32) {
    %c0_i32 = arith.constant 0 : i32
    %c0_i32_0 = arith.constant 0 : i32
    return %arg0, %c0_i32 : i32, i32
  }
}

</mosaic_0001>

<bundles_post_ra>
// kernel: tpu_custom_call.1
= control target key start
LH: loop header
LB: loop body
LE: loop exit
PB: predicated region body
PF: predicated region fallthrough
CT: control target
= control target key end

     0   :  { %vm161_vm0 = vcmask 1043456   ;;  %v515_v2 = vmov 0   ;;  %vm154_vm1 = vcmask 97280   ;;  %v516_v8 = vmov 1   ;;  %s669_s0 = inlined_call_operand.vmem [shape: f32[16,12], index: 0, kind: input, shape index: {}]   ;;  %s670_s1 = inlined_call_operand.vmem [shape: s32[16,3], index: 1, kind: input, shape index: {}]   ;;  %s671_s2 = inlined_call_operand.vmem [shape: f32[12,32], index: 2, kind: input, shape index: {}]   ;;  %s672_s3 = inlined_call_operand.vmem [shape: f32[128,32], index: 3, kind: input, shape index: {}]   ;;  %s673_s4 = inlined_call_operand.vmem [shape: f32[128,32], index: 4, kind: input, shape index: {}]   ;;  %s674_s5 = inlined_call_operand.hbm [shape: f32[16,32], index: 5, kind: output, shape index: {}]  }
   0x1   :  { %v26_v0 = vld [vmem:[%s670_s1 + $0x8] sm:$0xff]  ;;  %v25_v1 = vld [vmem:[%s670_s1] sm:$0xff]  ;;  %489 = vset.pattern.permute.xlu1 %v515_v2  ;;  %487 = vset.pattern.permute.xlu0 %v515_v2  ;;  %v78_v4 = vld [vmem:[%s672_s3 + $0x78] sm:$0xff]  ;;  %v517_v12 = vmov 2  }
   0x2   :  { %v24_v3 = vld [vmem:[%s671_s2 + $0x8] sm:$0xf]  ;;  %33 = vperm.xlu1 %489, %v26_v0   ;;  %30 = vperm.xlu0 %487, %v25_v1   ;;  %v23_v5 = vld [vmem:[%s671_s2] sm:$0xff]  ;;  %v77_v6 = vld [vmem:[%s672_s3 + $0x70] sm:$0xff] }
   0x3   :  { %438 = vmatprep.subr.msk.mxu1 %vm161_vm0, %v24_v3  ;;  %403 = vmatprep.subr.mxu0 %v78_v4  ;;  %v21_v7 = vld [vmem:[%s669_s0] sm:$0xff]  ;;  %v22_v9 = vld [vmem:[%s669_s0 + $0x8] sm:$0xff]  ;;  %v255_v11 = vld [vmem:[%s673_s4 + $0x78] sm:$0xff] }
   0x4   :  { %439 = vmatpush3.msk.msra.mxu1 %vm161_vm0, %v24_v3  ;;  %404 = vmatpush3.msra.mxu0 %v78_v4  ;;  %v76_v10 = vld [vmem:[%s672_s3 + $0x68] sm:$0xff]  ;;  %v75_v13 = vld [vmem:[%s672_s3 + $0x60] sm:$0xff]  ;;  %v254_v14 = vld [vmem:[%s673_s4 + $0x70] sm:$0xff] }
   0x5   :  { %440 = vmatprep.subr.mxu1 %v23_v5  ;;  %405 = vmatprep.subr.mxu0 %v77_v6  ;;  %v74_v15 = vld [vmem:[%s672_s3 + $0x58] sm:$0xff]  ;;  %v253_v16 = vld [vmem:[%s673_s4 + $0x68] sm:$0xff] }
   0x6   :  { %490 = vset.pattern.permute.xlu1 %v516_v8  ;;  %488 = vset.pattern.permute.xlu0 %v516_v8 }
   0x7   :  { %41 = vperm.xlu1 %490, %v26_v0   ;;  %38 = vperm.xlu0 %488, %v25_v1  }
   0x8   :  { %441 = vmatpush3.msra.mxu1 %v23_v5  ;;  %442 = vmatprep.mubr.msk.f32.mxu1 %vm154_vm1, %v21_v7 }
   0x9   :  { %406 = vmatpush3.msra.mxu0 %v77_v6  ;;  %443 = vmatmul.mubr.msk.f32.vlgmr.msra.gmra.mxu1 %vm154_vm1, %v22_v9 }
   0xa   :  { %407 = vmatprep.subr.mxu0 %v76_v10  ;;  %445 = vmatprep.subr.mxu1 %v255_v11 }
   0xb   :  { %491 = vset.pattern.permute.xlu1 %v517_v12  ;;  %492 = vset.pattern.permute.xlu0 %v517_v12 }
   0xc   :  { %52 = vperm.xlu1 %491, %v25_v1   ;;  %55 = vperm.xlu0 %492, %v26_v0  }
   0xd   :  { %408 = vmatpush3.msra.mxu0 %v76_v10  ;;  %446 = vmatpush3.msra.mxu1 %v255_v11 }
   0xe   :  { %10 = vsyncpa [#allocation3], 0  ;;  %409 = vmatprep.subr.mxu0 %v75_v13  ;;  %447 = vmatprep.subr.mxu1 %v254_v14  ;;  %v73_v17 = vld [vmem:[%s672_s3 + $0x50] sm:$0xff]  ;;  %v252_v18 = vld [vmem:[%s673_s4 + $0x60] sm:$0xff]  ;;  %v27_v41 = vlaneseq  ;;  %v518_v47 = vmov 1.0   ;;  %vm333_vm10 = vcmask 261120  }
   0xf   :  { %410 = vmatpush3.msra.mxu0 %v75_v13  ;;  %448 = vmatpush3.msra.mxu1 %v254_v14  ;;  %v72_v19 = vld [vmem:[%s672_s3 + $0x48] sm:$0xff]  ;;  %v251_v20 = vld [vmem:[%s673_s4 + $0x58] sm:$0xff]  ;;  %v71_v21 = vld [vmem:[%s672_s3 + $0x40] sm:$0xff] }
  0x10   :  { %411 = vmatprep.subr.mxu0 %v74_v15  ;;  %449 = vmatprep.subr.mxu1 %v253_v16  ;;  %v250_v22 = vld [vmem:[%s673_s4 + $0x50] sm:$0xff]  ;;  %v70_v23 = vld [vmem:[%s672_s3 + $0x38] sm:$0xff]  ;;  %v249_v24 = vld [vmem:[%s673_s4 + $0x48] sm:$0xff]  ;;  %v28_v44 = vand.u32 127, %v27_v41 }
  0x11   :  { %412 = vmatpush3.msra.mxu0 %v74_v15  ;;  %450 = vmatpush3.msra.mxu1 %v253_v16  ;;  %v69_v25 = vld [vmem:[%s672_s3 + $0x30] sm:$0xff]  ;;  %v248_v26 = vld [vmem:[%s673_s4 + $0x40] sm:$0xff]  ;;  %v68_v27 = vld [vmem:[%s672_s3 + $0x28] sm:$0xff] }
  0x12   :  { %413 = vmatprep.subr.mxu0 %v73_v17  ;;  %451 = vmatprep.subr.mxu1 %v252_v18  ;;  %v247_v28 = vld [vmem:[%s673_s4 + $0x38] sm:$0xff]  ;;  %v67_v29 = vld [vmem:[%s672_s3 + $0x20] sm:$0xff]  ;;  %v246_v30 = vld [vmem:[%s673_s4 + $0x30] sm:$0xff] }
  0x13   :  { %414 = vmatpush3.msra.mxu0 %v73_v17  ;;  %452 = vmatpush3.msra.mxu1 %v252_v18  ;;  %v66_v31 = vld [vmem:[%s672_s3 + $0x18] sm:$0xff]  ;;  %v245_v32 = vld [vmem:[%s673_s4 + $0x28] sm:$0xff]  ;;  %v65_v33 = vld [vmem:[%s672_s3 + $0x10] sm:$0xff] }
  0x14   :  { %415 = vmatprep.subr.mxu0 %v72_v19  ;;  %453 = vmatprep.subr.mxu1 %v251_v20  ;;  %v244_v34 = vld [vmem:[%s673_s4 + $0x20] sm:$0xff]  ;;  %v64_v35 = vld [vmem:[%s672_s3 + $0x8] sm:$0xff]  ;;  %v243_v36 = vld [vmem:[%s673_s4 + $0x18] sm:$0xff] }
  0x15   :  { %416 = vmatpush3.msra.mxu0 %v72_v19  ;;  %454 = vmatpush3.msra.mxu1 %v251_v20  ;;  %v63_v37 = vld [vmem:[%s672_s3] sm:$0xff]  ;;  %v242_v38 = vld [vmem:[%s673_s4 + $0x10] sm:$0xff]  ;;  %v241_v39 = vld [vmem:[%s673_s4 + $0x8] sm:$0xff]  ;;  %s519_s3 = smov [#allocation2]  }
  0x16   :  { %417 = vmatprep.subr.mxu0 %v71_v21  ;;  %455 = vmatprep.subr.mxu1 %v250_v22  ;;  %v240_v40 = vld [vmem:[%s673_s4] sm:$0xff]  ;;  %s341_s4 = sshll.u32 %s519_s3, 4  ;;  %s342_s4 = int_to_ptr.vmem [resolvable:$true] %s341_s4 }
  0x17   :  { %418 = vmatpush3.msra.mxu0 %v71_v21  ;;  %456 = vmatpush3.msra.mxu1 %v250_v22  ;;  %s493_s0 = scalar_lea.vmem %s342_s4, 256  ;;  %p498_p1 = scmp.lt.s32.totalorder %s342_s4, %s342_s4 }
  0x18   :  { %419 = vmatprep.subr.mxu0 %v70_v23  ;;  %457 = vmatprep.subr.mxu1 %v249_v24  ;;  %p494_p0 = scmp.ne.s32.totalorder %s342_s4, %s493_s0  ;;  %p499_p2 = scmp.lt.s32.totalorder %s493_s0, %s493_s0 }
  0x19   :  { %420 = vmatpush3.msra.mxu0 %v70_v23  ;;  %458 = vmatpush3.msra.mxu1 %v249_v24 }
  0x1a   :  { %421 = vmatprep.subr.mxu0 %v69_v25  ;;  %459 = vmatprep.subr.mxu1 %v248_v26  ;;  %p500_p3 = por %p499_p2, %p498_p1 }
  0x1b   :  { %422 = vmatpush3.msra.mxu0 %v69_v25  ;;  %460 = vmatpush3.msra.mxu1 %v248_v26 }
  0x1c   :  { %423 = vmatprep.subr.mxu0 %v68_v27  ;;  %461 = vmatprep.subr.mxu1 %v247_v28  ;;  %p501_p4 = pnand %p500_p3, %p494_p0 }
  0x1d   :  { %424 = vmatpush3.msra.mxu0 %v68_v27  ;;  %462 = vmatpush3.msra.mxu1 %v247_v28 }
  0x1e   :  { %425 = vmatprep.subr.mxu0 %v67_v29  ;;  %463 = vmatprep.subr.mxu1 %v246_v30 }
  0x1f   :  { %426 = vmatpush3.msra.mxu0 %v67_v29  ;;  %464 = vmatpush3.msra.mxu1 %v246_v30 }
  0x20   :  { %427 = vmatprep.subr.mxu0 %v66_v31  ;;  %465 = vmatprep.subr.mxu1 %v245_v32 }
  0x21   :  { %428 = vmatpush3.msra.mxu0 %v66_v31  ;;  %466 = vmatpush3.msra.mxu1 %v245_v32 }
  0x22   :  { %429 = vmatprep.subr.mxu0 %v65_v33  ;;  %467 = vmatprep.subr.mxu1 %v244_v34 }
  0x23   :  { %430 = vmatpush3.msra.mxu0 %v65_v33  ;;  %468 = vmatpush3.msra.mxu1 %v244_v34 }
  0x24   :  { %431 = vmatprep.subr.mxu0 %v64_v35  ;;  %469 = vmatprep.subr.mxu1 %v243_v36 }
  0x25   :  { %432 = vmatpush3.msra.mxu0 %v64_v35  ;;  %470 = vmatpush3.msra.mxu1 %v243_v36 }
  0x26   :  { %433 = vmatprep.subr.mxu0 %v63_v37  ;;  %471 = vmatprep.subr.mxu1 %v242_v38 }
  0x27   :  { %434 = vmatpush3.msra.mxu0 %v63_v37  ;;  %472 = vmatpush3.msra.mxu1 %v242_v38 }
  0x28   :  { %473 = vmatprep.subr.mxu1 %v241_v39 }
  0x29   :  { %474 = vmatpush3.msra.mxu1 %v241_v39 }
  0x2a   :  { %475 = vmatprep.subr.mxu1 %v240_v40 }
  0x2b   :  { %476 = vmatpush3.msra.mxu1 %v240_v40 }
  0x7d   :  { %v34_v42 = vpop.permute.xlu1 %33  ;;  %v31_v43 = vpop.permute.xlu0 %30 }
  0x7e   :  { %vm36_vm2 = vcmp.eq.s32.totalorder %v28_v44, %v34_v42  ;;  %vm35_vm5 = vcmp.eq.s32.totalorder %v28_v44, %v31_v43 }
  0x82   :  { %v42_v45 = vpop.permute.xlu1 %41  ;;  %v39_v46 = vpop.permute.xlu0 %38 }
  0x83   :  { %vm44_vm3 = vcmp.eq.s32.totalorder %v28_v44, %v42_v45  ;;  %vm43_vm4 = vcmp.eq.s32.totalorder %v28_v44, %v39_v46 }
  0x84   :  { %vm46_vm6 = vmor %vm36_vm2, %vm44_vm3 }
  0x85   :  { %vm45_vm7 = vmor %vm35_vm5, %vm43_vm4 }
  0x86   :  { %435 = vmatprep.mubr.msk.f32.mxu0 %vm45_vm7, %v518_v47 }
  0x87   :  { %436 = vmatmul.mubr.msk.f32.vlgmr.msra.gmra.mxu0 %vm46_vm6, %v518_v47  ;;  %v53_v48 = vpop.permute.xlu1 %52  ;;  %v56_v49 = vpop.permute.xlu0 %55 }
  0x88   :  { %vm57_vm8 = vcmp.eq.s32.totalorder %v28_v44, %v53_v48  ;;  %vm58_vm9 = vcmp.eq.s32.totalorder %v28_v44, %v56_v49 }
  0x89   :  { %477 = vmatprep.mubr.msk.f32.mxu1 %vm57_vm8, %v518_v47 }
  0x8a   :  { %478 = vmatmul.mubr.msk.f32.vlgmr.msra.gmra.mxu1 %vm58_vm9, %v518_v47 }
  0xc9   :  { %v444_v50 = vpop.f32.mrf.mxu1 }
  0xcb   :  { %v231_v52 = vpop.f32.mrf.mxu1 }
 0x147   :  { %v437_v51 = vpop.f32.mrf.mxu0 }
 0x148   :  { %v237_v53 = vadd.f32 %v444_v50, %v437_v51 }
 0x149   :  { %v145_v54 = vpop.f32.mrf.mxu0 }
 0x14a   :  { %v479_v55 = vpop.f32.mrf.mxu1  ;;  %v232_v56 = vadd.f32 %v231_v52, %v145_v54 }
 0x14b   :  { %v332_v57 = vadd.f32 %v479_v55, %v237_v53 }
 0x14c   :  { %v322_v58 = vpop.f32.mrf.mxu1 }
 0x14d   :  { %335 = vst.msk [vmem:[#allocation2 + $0x8] sm:$0xff] %vm333_vm10, %v332_v57  ;;  %v331_v59 = vadd.f32 %v322_v58, %v232_v56 }
 0x14f   :  { %334 = vst.msk [vmem:[#allocation2] sm:$0xff] %vm333_vm10, %v331_v59 }
 0x150   :  { %504 = shalt.err (!%p501_p4)
}
 0x151   :  { %s520_s11 = smov 128   ;;  %s521_s12 = smov 8  }
 0x152   :  { %347 = dma.vmem_to_hbm [thread:$0]  %s342_s4, 256, %s674_s5, [#allocation3], %s520_s11, %s520_s11, %s521_s12  }
 0x153   :  { %513 = dma.done.wait [#allocation3], 256  }
 0x154   :  { %514 = vsyncadd [#allocation3], 4294967040 }
 0x155   :  { %351 = vsyncpa [#allocation3], 1 }

</bundles_post_ra>
